<compile_context>
chip_gen: v5e
topology: v5e:2x2
jax: 0.10.0
libtpu: 0.0.40
codegen_flags: <defaults>
</compile_context>

<pallas_src>
import jax
import jax.numpy as jnp
from jax.experimental import pallas as pl
from jax.experimental.pallas import tpu as pltpu


def _round_up(x, m):
    return ((x + m - 1) // m) * m


# ---------------------------------------------------------------------------
# Kernels
# ---------------------------------------------------------------------------
def fc_kernel_fullk(x_ref, wt_ref, b_ref, o_ref):
    # Whole reduction dim in one block: single MXU pass + bias epilogue.
    x = x_ref[...].astype(wt_ref.dtype)            # fused flatten/cast (VPU)
    acc = jnp.dot(x, wt_ref[...], preferred_element_type=jnp.float32)
    o_ref[...] = (acc + b_ref[...]).astype(o_ref.dtype)


def fc_kernel_ktiled(x_ref, wt_ref, b_ref, o_ref):
    # Output block is f32 and resident across the K axis -> accumulate in-place.
    k = pl.program_id(2)

    @pl.when(k == 0)
    def _zero():
        o_ref[...] = jnp.zeros_like(o_ref)

    x = x_ref[...].astype(wt_ref.dtype)            # fused cast
    o_ref[...] += jnp.dot(x, wt_ref[...], preferred_element_type=jnp.float32)

    @pl.when(k == pl.num_programs(2) - 1)
    def _bias():
        o_ref[...] += b_ref[...]


# ---------------------------------------------------------------------------
# One-time parameter preparation (NOT per forward call).
# ---------------------------------------------------------------------------
def prepare_fc_params(weight, bias, *, compute_dtype=jnp.float32,
                      lane_align=256, tile_n_max=512, tile_k_max=1024,
                      tile_m_max=512, vmem_budget_bytes=24 * 1024 * 1024):
    """weight: (C, D) nn.Linear convention, bias: (C,).

    Returns (wt (Dp, Cp) in compute_dtype, bias (1, Cp) f32, meta dict).
    """
    C, D = weight.shape
    w_item = jnp.dtype(compute_dtype).itemsize

    # Lane-dense, MXU-aligned class dim.
    Cp = _round_up(C, lane_align)
    if Cp <= tile_n_max:
        tn = Cp
    else:
        tn = lane_align
        cand = (tile_n_max // lane_align) * lane_align
        while cand >= lane_align:
            if Cp % cand == 0:
                tn = cand
                break
            cand -= lane_align

    # Full-K if the double-buffered tiles fit a conservative VMEM budget
    # (sized for v7x's 64 MiB physical / 32 MiB scoped default).
    tm_cap = tile_m_max
    fullk_bytes = (2 * tm_cap * D * 4          # x tile (worst case f32)
                   + 2 * D * tn * w_item       # weight tile
                   + 2 * tm_cap * tn * 4)      # f32 output tile
    full_k = fullk_bytes <= vmem_budget_bytes

    if full_k:
        tk, Dp = D, D                           # no K padding, no K grid
    else:
        tk = min(tile_k_max, _round_up(D, 256))
        tk = _round_up(tk, 256)
        Dp = _round_up(D, tk)

    wt = jnp.zeros((Dp, Cp), compute_dtype)
    wt = wt.at[:D, :C].set(weight.T.astype(compute_dtype))
    b2 = jnp.zeros((1, Cp), jnp.float32)
    b2 = b2.at[0, :C].set(bias.astype(jnp.float32))

    meta = dict(C=C, D=D, tn=tn, tk=tk, full_k=full_k, tile_m_max=tile_m_max)
    return wt, b2, meta


# ---------------------------------------------------------------------------
# Forward:  x.float(); x = x.view(B, -1); x = Linear(d, C)(x)
# ---------------------------------------------------------------------------
def fc_forward(x, wt_padded, bias_padded, meta):
    B = x.shape[0]
    x2 = x.reshape(B, -1)                        # flatten only; cast is in-kernel
    D, C = meta["D"], meta["C"]
    assert x2.shape[1] == D, "input feature dim does not match prepared weight"
    Dp, Cp = wt_padded.shape
    tn, tk, full_k = meta["tn"], meta["tk"], meta["full_k"]
    tile_m_max = meta["tile_m_max"]

    # --- M tile: single block for small/medium batch (weight streams once);
    #     otherwise a mult-of-8 tile minimizing padding.
    if B <= tile_m_max:
        tm, Bp = B, B                            # block dim == full dim: legal
    else:
        tm, best_pad = 8, None
        cand = (tile_m_max // 8) * 8
        while cand >= 8:
            pad = _round_up(B, cand) - B
            if best_pad is None or pad < best_pad:
                tm, best_pad = cand, pad
            if pad == 0:
                break
            cand -= 8
        Bp = _round_up(B, tm)

    if full_k:
        if Bp != B:                              # M pad rows are sliced off later
            x2 = jnp.pad(x2, ((0, Bp - B), (0, 0)))
        grid = (Bp // tm, Cp // tn)
        kernel = fc_kernel_fullk
        in_specs = [
            pl.BlockSpec((tm, D), lambda i, j: (i, 0)),       # x
            pl.BlockSpec((D, tn), lambda i, j: (0, j)),       # W^T
            pl.BlockSpec((1, tn), lambda i, j: (0, j)),       # bias
        ]
        out_spec = pl.BlockSpec((tm, tn), lambda i, j: (i, j))
        dims = ("parallel", "parallel")
    else:
        if (Bp, Dp) != x2.shape:                 # K pad MUST be zero; jnp.pad fuses
            x2 = jnp.pad(x2, ((0, Bp - B), (0, Dp - D)))
        grid = (Bp // tm, Cp // tn, Dp // tk)
        kernel = fc_kernel_ktiled
        in_specs = [
            pl.BlockSpec((tm, tk), lambda i, j, k: (i, k)),   # x
            pl.BlockSpec((tk, tn), lambda i, j, k: (k, j)),   # W^T
            pl.BlockSpec((1, tn), lambda i, j, k: (0, j)),    # bias
        ]
        out_spec = pl.BlockSpec((tm, tn), lambda i, j, k: (i, j))
        dims = ("parallel", "parallel", "arbitrary")

    m_blocks, n_blocks = Bp // tm, Cp // tn
    x_item = jnp.dtype(x2.dtype).itemsize
    w_item = jnp.dtype(wt_padded.dtype).itemsize

    out = pl.pallas_call(
        kernel,
        out_shape=jax.ShapeDtypeStruct((Bp, Cp), jnp.float32),
        grid_spec=pltpu.PrefetchScalarGridSpec(
            num_scalar_prefetch=0,
            grid=grid,
            in_specs=in_specs,
            out_specs=out_spec,
        ),
        compiler_params=pltpu.CompilerParams(
            dimension_semantics=dims,
            vmem_limit_bytes=48 * 1024 * 1024,   # within v7x 64 MiB physical
        ),
        cost_estimate=pl.CostEstimate(
            flops=2 * Bp * Dp * Cp,
            transcendentals=0,
            # Account for re-streaming: x re-read per N block, W per M block.
            bytes_accessed=(Bp * Dp * x_item * n_blocks
                            + Dp * Cp * w_item * m_blocks
                            + Cp * 4 + Bp * Cp * 4),
        ),
    )(x2, wt_padded, bias_padded)

    return out[:B, :C]


def init_linear_params(key, d, nr_classes):
    # nn.Linear default init: U(-1/sqrt(d), 1/sqrt(d)).
    kw, kb = jax.random.split(key)
    bound = 1.0 / jnp.sqrt(jnp.float32(d))
    weight = jax.random.uniform(kw, (nr_classes, d), jnp.float32, -bound, bound)
    bias = jax.random.uniform(kb, (nr_classes,), jnp.float32, -bound, bound)
    return weight, bias


if __name__ == "__main__":
    key = jax.random.PRNGKey(0)
    k_x, k_p = jax.random.split(key)

    # Small shapes consistent with the module: input (B, 4, 8) -> d = 32.
    B, C_in, L = 2, 4, 8
    d = C_in * L
    nr_classes = 8

    x = jax.random.normal(k_x, (B, C_in, L), jnp.float32)
    weight, bias = init_linear_params(k_p, d, nr_classes)

    ref = x.astype(jnp.float32).reshape(B, -1) @ weight.T + bias

    # --- f32 path: exact parity with the PyTorch module semantics ---
    wt32, b32, meta32 = prepare_fc_params(weight, bias, compute_dtype=jnp.float32)
    out32 = jax.block_until_ready(fc_forward(x, wt32, b32, meta32))
    assert out32.shape == (B, nr_classes)
    assert jnp.allclose(out32, ref, atol=1e-5, rtol=1e-5)

    # --- bf16 MXU fast path (v6e/v7x production dtype), f32 accumulation ---
    # TODO(synk): optional fp8 (v7x) / int8 (v5e/v6e) weight-storage path not implemented.
    wt16, b16, meta16 = prepare_fc_params(weight, bias, compute_dtype=jnp.bfloat16)
    out16 = jax.block_until_ready(fc_forward(x, wt16, b16, meta16))
    assert out16.shape == (B, nr_classes)
    assert jnp.allclose(out16, ref, atol=5e-2, rtol=5e-2)

    print("KERNEL_OK")
</pallas_src>

<mosaic_0001>
module attributes {stable_mosaic.version = 11 : i64} {
  func.func @fc_kernel_fullk(%arg0: i32, %arg1: i32, %arg2: memref<2x32xf32, #tpu.memory_space<vmem>>, %arg3: memref<32x256xf32, #tpu.memory_space<vmem>>, %arg4: memref<1x256xf32, #tpu.memory_space<vmem>>, %arg5: memref<2x256xf32, #tpu.memory_space<vmem>>) attributes {dimension_semantics = [#tpu.dimension_semantics<parallel>, #tpu.dimension_semantics<parallel>], iteration_bounds = array<i64: 1, 1>, scalar_prefetch = 0 : i64, scratch_operands = 0 : i64, tpu.core_type = #tpu.core_type<tc>, window_params = [{transform_indices = @transform_0, window_bounds = array<i64: 2, 32>}, {transform_indices = @transform_1, window_bounds = array<i64: 32, 256>}, {transform_indices = @transform_2, window_bounds = array<i64: 1, 256>}, {transform_indices = @transform_3, window_bounds = array<i64: 2, 256>}]} {
    %c0 = arith.constant 0 : index
    %c0_0 = arith.constant 0 : index
    %0 = vector.load %arg2[%c0, %c0_0] : memref<2x32xf32, #tpu.memory_space<vmem>>, vector<2x32xf32>
    %c0_1 = arith.constant 0 : index
    %c0_2 = arith.constant 0 : index
    %1 = vector.load %arg3[%c0_1, %c0_2] : memref<32x256xf32, #tpu.memory_space<vmem>>, vector<32x256xf32>
    %cst = arith.constant dense<0.000000e+00> : vector<2x256xf32>
    %2 = tpu.matmul %0, %1, %cst {dimension_numbers = #tpu.dot_dimension_numbers<[1], [0], [0], [1], [0, 0, 1, 1], [], []>} : vector<2x32xf32>, vector<32x256xf32>, vector<2x256xf32> -> vector<2x256xf32>
    %c0_3 = arith.constant 0 : index
    %c0_4 = arith.constant 0 : index
    %3 = vector.load %arg4[%c0_3, %c0_4] : memref<1x256xf32, #tpu.memory_space<vmem>>, vector<1x256xf32>
    %4 = vector.broadcast %3 : vector<1x256xf32> to vector<2x256xf32>
    %5 = arith.addf %2, %4 : vector<2x256xf32>
    %c0_5 = arith.constant 0 : index
    %c0_6 = arith.constant 0 : index
    %6 = vector.load %arg5[%c0_5, %c0_6] : memref<2x256xf32, #tpu.memory_space<vmem>>, vector<2x256xf32>
    tpu.vector_store %arg5[%c0_5, %c0_6], %5 {strides = array<i32>} : memref<2x256xf32, #tpu.memory_space<vmem>>, vector<2x256xf32>,
    return
  }
  func.func @transform_0(%arg0: i32, %arg1: i32) -> (i32, i32) {
    %c0_i32 = arith.constant 0 : i32
    %c0_i32_0 = arith.constant 0 : i32
    return %arg0, %c0_i32 : i32, i32
  }
  func.func @transform_1(%arg0: i32, %arg1: i32) -> (i32, i32) {
    %c0_i32 = arith.constant 0 : i32
    %c0_i32_0 = arith.constant 0 : i32
    return %c0_i32, %arg1 : i32, i32
  }
  func.func @transform_2(%arg0: i32, %arg1: i32) -> (i32, i32) {
    %c0_i32 = arith.constant 0 : i32
    %c0_i32_0 = arith.constant 0 : i32
    return %c0_i32, %arg1 : i32, i32
  }
  func.func @transform_3(%arg0: i32, %arg1: i32) -> (i32, i32) {
    %c0_i32 = arith.constant 0 : i32
    return %arg0, %arg1 : i32, i32
  }
}

</mosaic_0001>

<bundles_post_ra>
// kernel: tpu_custom_call.1
= control target key start
LH: loop header
LB: loop body
LE: loop exit
PB: predicated region body
PF: predicated region fallthrough
CT: control target
= control target key end

     0   :  { %8 = vsyncpa [#allocation3], 0  ;;  %s290_s0 = inlined_call_operand.hbm [shape: f32[2,32], index: 0, kind: input, shape index: {}]   ;;  %s291_s1 = inlined_call_operand.hbm [shape: f32[32,256], index: 1, kind: input, shape index: {}]   ;;  %s292_s2 = inlined_call_operand.hbm [shape: f32[1,256], index: 2, kind: input, shape index: {}]   ;;  %s293_s3 = inlined_call_operand.hbm [shape: f32[2,256], index: 3, kind: output, shape index: {}]  }
   0x1   :  { %9 = vsyncpa [#allocation6], 0  ;;  %s26_s14 = sshll.u32 %s291_s1, 4  ;;  %s27_s14 = int_to_ptr.hbm [resolvable:$true] %s26_s14 }
   0x2   :  { %10 = vsyncpa [#allocation4], 0  ;;  %s252_s15 = smov [#allocation5]   ;;  %s16_s19 = sshll.u32 %s290_s0, 4  ;;  %s17_s19 = int_to_ptr.hbm [resolvable:$true] %s16_s19 }
   0x3   :  { %s28_s16 = sshll.u32 %s252_s15, 4  ;;  %s253_s20 = smov 256   ;;  %s29_s16 = int_to_ptr.vmem [resolvable:$true] %s28_s16 }
   0x4   :  { %s254_s21 = smov 16   ;;  %s255_s22 = smov [#allocation2]  }
   0x5   :  { %34 = dma.hbm_to_vmem [thread:$0]  %s27_s14, 1024, %s29_s16, [#allocation6], %s253_s20, %s253_s20, %s254_s21  }
   0x6   :  { %s18_s23 = sshll.u32 %s255_s22, 4  ;;  %s40_s26 = sshll.u32 %s292_s2, 4  ;;  %s19_s23 = int_to_ptr.vmem [resolvable:$true] %s18_s23  ;;  %s41_s26 = int_to_ptr.hbm [resolvable:$true] %s40_s26 }
   0x7   :  { %21 = dma.hbm_to_vmem [thread:$0]  %s17_s19, 32, %s19_s23, [#allocation3]  }
   0x8   :  { %s256_s1 = smov [#allocation7]  }
   0x9   :  { %s42_s27 = sshll.u32 %s256_s1, 4  ;;  %s43_s27 = int_to_ptr.vmem [resolvable:$true] %s42_s27 }
   0xa   :  { %45 = dma.hbm_to_vmem [thread:$0]  %s41_s26, 32, %s43_s27, [#allocation6]  }
   0xb   :  { %246 = dma.done.wait [#allocation3], 32  }
   0xc   :  { %247 = vsyncadd [#allocation3], 4294967264 }
   0xd   :  { %248 = dma.done.wait [#allocation6], 1056  }
   0xe   :  { %249 = vsyncadd [#allocation6], 4294966240  ;;  %v66_v0 = vld [vmem:[#allocation5 + $0x38] sm:$0xff]  ;;  %v65_v1 = vld [vmem:[#allocation5 + $0x30] sm:$0xff]  ;;  %vm73_vm0 = vcmask 261120   ;;  %s257_s0 = smov [#allocation8]  }
   0xf   :  { %v64_v2 = vld [vmem:[#allocation5 + $0x28] sm:$0xff]  ;;  %109 = vmatpush.msra.mxu1 %v66_v0  ;;  %89 = vmatpush.msra.mxu0 %v65_v1  ;;  %v63_v3 = vld [vmem:[#allocation5 + $0x20] sm:$0xff]  ;;  %v62_v4 = vld [vmem:[#allocation5 + $0x18] sm:$0xff]  ;;  %s129_s2 = sshll.u32 %s257_s0, 4  ;;  %s131_s30 = sshll.u32 %s293_s3, 4  ;;  %vm120_vm1 = vcmask 1041408   ;;  %s130_s2 = int_to_ptr.vmem [resolvable:$true] %s129_s2  ;;  %s132_s30 = int_to_ptr.hbm [resolvable:$true] %s131_s30 }
  0x10   :  { %v61_v5 = vld [vmem:[#allocation5 + $0x10] sm:$0xff]  ;;  %v60_v6 = vld [vmem:[#allocation5 + $0x8] sm:$0xff]  ;;  %v59_v7 = vld [vmem:[#allocation5] sm:$0xff] }
  0x11   :  { %110 = vmatpush.msra.mxu1 %v64_v2  ;;  %90 = vmatpush.msra.mxu0 %v63_v3  ;;  %v58_v8 = vld [vmem:[#allocation2] sm:$0x3]  ;;  %v67_v9 = vld [vmem:[#allocation7] sm:$0x3] }
  0x12   :  { %v70_v10 = vperm.slane %v67_v9, 1  ;;  %v69_v11 = vperm.slane %v67_v9, 0 }
  0x13   :  { %111 = vmatpush.msra.mxu1 %v62_v4  ;;  %91 = vmatpush.msra.mxu0 %v61_v5 }
  0x15   :  { %112 = vmatpush.msra.mxu1 %v60_v6  ;;  %92 = vmatpush.msra.mxu0 %v59_v7 }
  0x16   :  { %143 = vmatmul.msk.f32.vlgmr.msra.gmra.mxu1 %vm73_vm0, %v58_v8  ;;  %142 = vmatmul.msk.f32.vlgmr.msra.gmra.mxu0 %vm73_vm0, %v58_v8 }
  0x93   :  { %v114_v12 = vpop.f32.mrf.mxu1  ;;  %v94_v13 = vpop.f32.mrf.mxu0 }
  0x94   :  { %v115_v14 = vadd.f32 %v114_v12, %v70_v10  ;;  %v95_v15 = vadd.f32 %v94_v13, %v69_v11 }
  0x96   :  { %v119_v16 = vrot.slane %v115_v14, 6 }
  0x98   :  { %v121_v17 = vsel %vm120_vm1, %v95_v15, %v119_v16 }
  0x99   :  { %123 = vst [vmem:[#allocation8] sm:$0xf] %v121_v17 }
  0x9a   :  { %134 = dma.vmem_to_hbm [thread:$0]  %s130_s2, 64, %s132_s30, [#allocation4]  }
  0x9b   :  { %250 = dma.done.wait [#allocation4], 64  }
  0x9c   :  { %251 = vsyncadd [#allocation4], 4294967232 }
  0x9d   :  { %139 = vsyncpa [#allocation3], 1 }
  0x9e   :  { %140 = vsyncpa [#allocation6], 1 }
  0x9f   :  { %141 = vsyncpa [#allocation4], 1 }

</bundles_post_ra>
